<compile_context>
chip_gen: v7x
topology: tpu7x:2x2x1
jax: 0.10.0
libtpu: 0.0.40
codegen_flags: <defaults>
</compile_context>

<pallas_src>
import functools

import jax
import jax.numpy as jnp
from jax import lax
from jax.experimental import pallas as pl
from jax.experimental.pallas import tpu as pltpu

_BN_EPS = 1e-5
_LANE = 128

# Fused (gridless) path: whole problem lives in VMEM.  Live footprint ~3 KiB/row
# (input + 2 outputs + ~3 compute temporaries, each [N,128] f32), so 16K rows is
# ~48 MiB: fits v7x (64 MiB physical) with the scoped limit below, and easily fits
# v5e/v6e (128 MiB physical; v5e's scoped default of 16 MiB makes the bump mandatory).
_FUSED_MAX_ROWS = 16 * 1024
_FUSED_VMEM_LIMIT = 56 * 1024 * 1024
_TILED_VMEM_LIMIT = 32 * 1024 * 1024


def _round_up(x, m):
    return ((x + m - 1) // m) * m


# --------------------------------------------------------------------------
# Shared in-kernel helpers
# --------------------------------------------------------------------------
def _mm(a, b, use_bf16):
    """MXU matmul with f32 accumulation; optionally bf16 operands (v6e/v7x fast path)."""
    if use_bf16:
        return jnp.dot(a.astype(jnp.bfloat16), b.astype(jnp.bfloat16),
                       preferred_element_type=jnp.float32)
    return jnp.dot(a, b, preferred_element_type=jnp.float32)


def _masked_softmax(logits, d_valid):
    """Row softmax over the first `d_valid` lanes of a [rows, Dpad] block."""
    cols = lax.broadcasted_iota(jnp.int32, logits.shape, 1)
    valid = cols < d_valid
    logits = jnp.where(valid, logits, -1e30)
    m = jnp.max(logits, axis=1, keepdims=True)
    e = jnp.where(valid, jnp.exp(logits - m), 0.0)
    denom = jnp.sum(e, axis=1, keepdims=True)
    # Exact reciprocal (approx=True would break the tight f32 checks).
    return e * pl.reciprocal(denom, approx=False)


def _row_mask(nt, n_true, tiles_per_core):
    """[1, nt] f32 mask: 1.0 for rows of this tile that are real batch rows."""
    tile = pl.program_id(0) * tiles_per_core + pl.program_id(1)
    ridx = lax.broadcasted_iota(jnp.int32, (1, nt), 1) + tile * nt
    return (ridx < n_true).astype(jnp.float32)


# --------------------------------------------------------------------------
# Path A: fully fused, gridless kernel (batches up to _FUSED_MAX_ROWS)
# --------------------------------------------------------------------------
def _make_fused_kernel(depth, d_out, use_bf16):
    n_layers = 2 * depth

    def kernel(x_ref, w_ref, aux_ref, out_ref, lat_ref):
        h = x_ref[...]
        nrows = h.shape[0]
        ones = jnp.ones((1, nrows), jnp.float32)
        inv_n = 1.0 / nrows

        for l in range(n_layers):
            aux = aux_ref[l]                       # [3, Dpad] = (bias, gamma, beta)
            b, g, be = aux[0:1, :], aux[1:2, :], aux[2:3, :]
            pre = _mm(h, w_ref[l], use_bf16) + b
            if l == n_layers - 1:
                out_ref[...] = _masked_softmax(pre, d_out)
            else:
                # BatchNorm1d (training stats) via MXU reductions; centered form.
                mean = jnp.dot(ones, pre, preferred_element_type=jnp.float32) * inv_n
                hc = pre - mean
                var = jnp.dot(ones, hc * hc, preferred_element_type=jnp.float32) * inv_n
                scale = g * lax.rsqrt(var + _BN_EPS)   # gamma=0 on padded lanes keeps them 0
                h = jnp.maximum(hc * scale + be, 0.0)
                if l == depth - 1:
                    lat_ref[...] = h

    return kernel


def _fused_forward(x, params, prediction_dim, dp, use_bf16):
    depth = len(prediction_dim) - 1
    n = x.shape[0]
    d0 = prediction_dim[0]
    x_p = jnp.pad(x, ((0, 0), (0, dp - x.shape[1])))
    vmem = pl.BlockSpec(memory_space=pltpu.MemorySpace.VMEM)
    out_pad, lat_pad = pl.pallas_call(
        _make_fused_kernel(depth, d0, use_bf16),
        out_shape=(jax.ShapeDtypeStruct((n, dp), jnp.float32),
                   jax.ShapeDtypeStruct((n, dp), jnp.float32)),
        in_specs=[vmem, vmem, vmem],
        out_specs=(vmem, vmem),
        compiler_params=pltpu.CompilerParams(vmem_limit_bytes=_FUSED_VMEM_LIMIT),
    )(x_p, params["w_slab"], params["aux_slab"])
    return out_pad, lat_pad


# --------------------------------------------------------------------------
# Path B: batch-tiled multi-phase pipeline (huge batches, global BatchNorm)
#
# Stats layout per phase: one f32 array [split, 8, Dpad]; row 0 = per-core sum,
# row 1 = per-core sumsq (rows 2..7 zero).  The leading axis is the per-core
# partial (v7x megacore); the next phase adds the partials when forming mean/var.
# --------------------------------------------------------------------------
def _make_first_kernel(n_true, nt, tiles_per_core, use_bf16):
    """linear[0]: write pre-activation tiles; accumulate per-core (sum, sumsq)."""

    def kernel(x_ref, w_ref, aux_ref, pre_ref, stats_ref):
        i = pl.program_id(1)
        pre = _mm(x_ref[...], w_ref[...], use_bf16) + aux_ref[0:1, :]
        pre_ref[...] = pre.astype(pre_ref.dtype)

        @pl.when(i == 0)
        def _():
            stats_ref[...] = jnp.zeros_like(stats_ref)

        m = _row_mask(nt, n_true, tiles_per_core)  # exclude padded batch rows
        stats_ref[:, 0:1, :] += jnp.dot(m, pre, preferred_element_type=jnp.float32)[None]
        stats_ref[:, 1:2, :] += jnp.dot(m, pre * pre, preferred_element_type=jnp.float32)[None]

    return kernel


def _bn_scale_shift(stats_in_ref, aux_prev_ref, inv_n):
    """Fold BatchNorm into per-feature (scale, shift); tiny [1,128] vector work."""
    tot = jnp.sum(stats_in_ref[...], axis=0)          # (8, Dpad): row0=sum, row1=sumsq
    mean = tot[0:1, :] * inv_n
    var = jnp.maximum(tot[1:2, :] * inv_n - mean * mean, 0.0)
    scale = aux_prev_ref[1:2, :] * lax.rsqrt(var + _BN_EPS)   # gamma * inv_std
    shift = aux_prev_ref[2:3, :] - mean * scale               # beta  - mean * scale
    return scale, shift


def _make_mid_kernel(n_true, nt, tiles_per_core, write_latent, inv_n, use_bf16):
    """BN(layer l-1) + ReLU + linear[l]; accumulate layer-l per-core statistics."""

    def kernel(pre_in_ref, stats_in_ref, aux_prev_ref, w_ref, aux_cur_ref, *out_refs):
        if write_latent:
            lat_ref, pre_out_ref, stats_ref = out_refs
        else:
            pre_out_ref, stats_ref = out_refs
        i = pl.program_id(1)

        scale, shift = _bn_scale_shift(stats_in_ref, aux_prev_ref, inv_n)
        h = jnp.maximum(pre_in_ref[...].astype(jnp.float32) * scale + shift, 0.0)
        if write_latent:
            lat_ref[...] = h

        pre = _mm(h, w_ref[...], use_bf16) + aux_cur_ref[0:1, :]
        pre_out_ref[...] = pre.astype(pre_out_ref.dtype)

        @pl.when(i == 0)
        def _():
            stats_ref[...] = jnp.zeros_like(stats_ref)

        m = _row_mask(nt, n_true, tiles_per_core)
        stats_ref[:, 0:1, :] += jnp.dot(m, pre, preferred_element_type=jnp.float32)[None]
        stats_ref[:, 1:2, :] += jnp.dot(m, pre * pre, preferred_element_type=jnp.float32)[None]

    return kernel


def _make_last_kernel(d_out, write_latent, inv_n, use_bf16):
    """BN(last BN layer) + ReLU + final linear + lane-masked softmax."""

    def kernel(pre_in_ref, stats_in_ref, aux_prev_ref, w_ref, aux_cur_ref, *out_refs):
        if write_latent:
            out_ref, lat_ref = out_refs
        else:
            (out_ref,) = out_refs

        scale, shift = _bn_scale_shift(stats_in_ref, aux_prev_ref, inv_n)
        h = jnp.maximum(pre_in_ref[...].astype(jnp.float32) * scale + shift, 0.0)
        if write_latent:
            lat_ref[...] = h

        logits = _mm(h, w_ref[...], use_bf16) + aux_cur_ref[0:1, :]
        out_ref[...] = _masked_softmax(logits, d_out)

    return kernel


def _tiled_forward(x, params, prediction_dim, dp, row_tile, use_bf16):
    depth = len(prediction_dim) - 1
    n_layers = 2 * depth
    n = x.shape[0]
    d0 = prediction_dim[0]

    # (8,128)-aligned row tile; multiple of 16 so bf16 activation blocks tile cleanly.
    nt = _round_up(max(16, min(row_tile, n)), 16)
    tiles_total = -(-n // nt)
    split = 2 if tiles_total >= 2 else 1          # per-core partial stats (v7x megacore)
    tiles_total = _round_up(tiles_total, split)
    tiles_per_core = tiles_total // split
    n_pad = tiles_total * nt
    grid = (split, tiles_per_core)

    x_p = jnp.pad(x, ((0, n_pad - n), (0, dp - x.shape[1])))
    w_slab, aux_slab = params["w_slab"], params["aux_slab"]
    act_dtype = jnp.bfloat16 if use_bf16 else jnp.float32

    act_spec = pl.BlockSpec((nt, dp), lambda c, i: (c * tiles_per_core + i, 0))
    stats_out_spec = pl.BlockSpec((1, 8, dp), lambda c, i: (c, 0, 0))      # per-core partial
    stats_in_spec = pl.BlockSpec((split, 8, dp), lambda c, i: (0, 0, 0))   # all partials

    def w_spec(l):        # select layer in the index_map; leading slab dim squeezed
        return pl.BlockSpec((None, dp, dp), lambda c, i, l=l: (l, 0, 0))

    def aux_spec(l):
        return pl.BlockSpec((None, 3, dp), lambda c, i, l=l: (l, 0, 0))

    acc_params = pltpu.CompilerParams(
        dimension_semantics=("parallel", "arbitrary"),
        vmem_limit_bytes=_TILED_VMEM_LIMIT)
    par_params = pltpu.CompilerParams(
        dimension_semantics=("parallel", "parallel"),
        vmem_limit_bytes=_TILED_VMEM_LIMIT)

    act_shape = jax.ShapeDtypeStruct((n_pad, dp), act_dtype)
    f32_shape = jax.ShapeDtypeStruct((n_pad, dp), jnp.float32)
    stats_shape = jax.ShapeDtypeStruct((split, 8, dp), jnp.float32)
    inv_n = 1.0 / n

    # Phase 0: linear[0] + per-core batch-stat accumulation.
    pre, stats = pl.pallas_call(
        _make_first_kernel(n, nt, tiles_per_core, use_bf16),
        grid=grid,
        in_specs=[act_spec, w_spec(0), aux_spec(0)],
        out_specs=(act_spec, stats_out_spec),
        out_shape=(act_shape, stats_shape),
        compiler_params=acc_params,
    )(x_p, w_slab, aux_slab)

    lat_pad = None
    # Phases 1..L-2: normalize previous layer, linear[l], accumulate its stats.
    for l in range(1, n_layers - 1):
        write_latent = (l == depth)
        out_specs = (act_spec, stats_out_spec)
        out_shapes = (act_shape, stats_shape)
        if write_latent:
            out_specs = (act_spec,) + out_specs      # latent kept f32
            out_shapes = (f32_shape,) + out_shapes
        outs = pl.pallas_call(
            _make_mid_kernel(n, nt, tiles_per_core, write_latent, inv_n, use_bf16),
            grid=grid,
            in_specs=[act_spec, stats_in_spec, aux_spec(l - 1), w_spec(l), aux_spec(l)],
            out_specs=out_specs,
            out_shape=out_shapes,
            compiler_params=acc_params,
        )(pre, stats, aux_slab, w_slab, aux_slab)
        if write_latent:
            lat_pad, pre, stats = outs
        else:
            pre, stats = outs

    # Final phase: normalize last BN layer, final linear, masked softmax.
    # No statistics -> both grid axes fully parallel (megacore-shardable).
    l = n_layers - 1
    write_latent = (depth == 1)   # latent comes from the final phase only if depth == 1
    out_specs = (act_spec,)
    out_shapes = (f32_shape,)
    if write_latent:
        out_specs = out_specs + (act_spec,)
        out_shapes = out_shapes + (f32_shape,)
    outs = pl.pallas_call(
        _make_last_kernel(d0, write_latent, inv_n, use_bf16),
        grid=grid,
        in_specs=[act_spec, stats_in_spec, aux_spec(l - 1), w_spec(l), aux_spec(l)],
        out_specs=out_specs,
        out_shape=out_shapes,
        compiler_params=par_params,
    )(pre, stats, aux_slab, w_slab, aux_slab)
    if write_latent:
        out_pad, lat_pad = outs
    else:
        (out_pad,) = outs
    return out_pad, lat_pad


# --------------------------------------------------------------------------
# Parameters & wrappers
# --------------------------------------------------------------------------
def init_prediction_params(key, prediction_dim):
    """PyTorch-equivalent init, packed into lane-padded slabs.

    Linear: W [out, in], b [out], uniform(+-1/sqrt(in)).  BN: gamma=1, beta=0.
    Returns:
      w_slab   [L, Dp, Dp]  zero-padded transposed weights (h @ W layout)
      aux_slab [L, 3, Dp]   rows = (bias, gamma, beta), zero-padded
      ref_layers            unpadded (W^T, b) per layer for the pure-JAX reference
    Padded lanes of gamma/beta/bias MUST stay zero (keeps padded lanes exactly 0).
    """
    depth = len(prediction_dim) - 1
    n_layers = 2 * depth
    dp = _round_up(max(prediction_dim), _LANE)

    dims = [(prediction_dim[i], prediction_dim[i + 1]) for i in range(depth)]
    dims += [(prediction_dim[i], prediction_dim[i - 1]) for i in range(depth, 0, -1)]

    keys = jax.random.split(key, n_layers)
    w_slab = jnp.zeros((n_layers, dp, dp), jnp.float32)
    aux_slab = jnp.zeros((n_layers, 3, dp), jnp.float32)
    ref_layers = []
    for l, (d_in, d_out) in enumerate(dims):
        kw, kb = jax.random.split(keys[l])
        bound = float(d_in) ** -0.5
        w = jax.random.uniform(kw, (d_out, d_in), jnp.float32, -bound, bound)
        b = jax.random.uniform(kb, (d_out,), jnp.float32, -bound, bound)
        w_slab = w_slab.at[l, :d_in, :d_out].set(w.T)
        aux_slab = aux_slab.at[l, 0, :d_out].set(b)
        if l < n_layers - 1:  # BN follows every linear except the last
            aux_slab = aux_slab.at[l, 1, :d_out].set(1.0)  # gamma (beta stays 0)
        ref_layers.append((w.T, b))
    return {"w_slab": w_slab, "aux_slab": aux_slab, "ref_layers": ref_layers}


@functools.partial(jax.jit, static_argnames=("prediction_dim", "use_tiled",
                                              "row_tile", "use_bf16"))
def prediction_forward(x, params, prediction_dim, use_tiled=None, row_tile=1024,
                       use_bf16=False):
    """Runs the Prediction forward pass.  Returns (output, latent).

    prediction_dim must be a tuple (it is a static jit argument).
    use_bf16=True uses bf16 MXU operands / bf16 inter-phase activations (v6e/v7x
    fast path) at ~1e-2 accuracy; default keeps f32 accuracy.
    """
    n = x.shape[0]
    dp = _round_up(max(prediction_dim), _LANE)
    d0 = prediction_dim[0]
    dlat = prediction_dim[-1]
    if use_tiled is None:
        use_tiled = n > _FUSED_MAX_ROWS
    if use_tiled:
        out_pad, lat_pad = _tiled_forward(x, params, prediction_dim, dp, row_tile, use_bf16)
    else:
        out_pad, lat_pad = _fused_forward(x, params, prediction_dim, dp, use_bf16)
    return out_pad[:n, :d0], lat_pad[:n, :dlat]


# --------------------------------------------------------------------------
# Pure-JAX reference (PyTorch training-mode semantics) for verification
# --------------------------------------------------------------------------
def _reference_forward(x, params, prediction_dim):
    depth = len(prediction_dim) - 1
    n_layers = 2 * depth
    layers = params["ref_layers"]
    h = x
    latent = None
    out = None
    for l in range(n_layers):
        wT, b = layers[l]
        pre = jnp.dot(h, wT, precision="highest") + b
        if l == n_layers - 1:
            out = jax.nn.softmax(pre, axis=1)
        else:
            # BN with gamma=1, beta=0 (matches init_prediction_params).
            mean = jnp.mean(pre, axis=0, keepdims=True)
            var = jnp.mean((pre - mean) ** 2, axis=0, keepdims=True)
            h = jnp.maximum((pre - mean) / jnp.sqrt(var + _BN_EPS), 0.0)
            if l == depth - 1:
                latent = h
    return out, latent


if __name__ == "__main__":
    prediction_dim = (32, 64, 16)  # [feat_dim, hidden, latent_dim]

    key = jax.random.PRNGKey(0)
    kx, kp, kx2 = jax.random.split(key, 3)
    params = init_prediction_params(kp, prediction_dim)

    # ---- small batch: fused, gridless path (f32) ----
    num = 8
    x = jax.random.normal(kx, (num, prediction_dim[0]), jnp.float32)
    output, latent = prediction_forward(x, params, prediction_dim)
    jax.block_until_ready((output, latent))

    ref_out, ref_lat = _reference_forward(x, params, prediction_dim)
    assert output.shape == (num, prediction_dim[0])
    assert latent.shape == (num, prediction_dim[-1])
    assert jnp.allclose(output, ref_out, atol=1e-4, rtol=1e-4)
    assert jnp.allclose(latent, ref_lat, atol=1e-4, rtol=1e-4)
    assert jnp.allclose(jnp.sum(output, axis=1), 1.0, atol=1e-5)

    # ---- larger batch, forced tiled multi-phase path (f32, global BatchNorm) ----
    num2 = 1900  # non-multiple of the tile -> exercises padded-row masking
    x2 = jax.random.normal(kx2, (num2, prediction_dim[0]), jnp.float32)
    out2, lat2 = prediction_forward(x2, params, prediction_dim,
                                    use_tiled=True, row_tile=512)
    jax.block_until_ready((out2, lat2))

    ref_out2, ref_lat2 = _reference_forward(x2, params, prediction_dim)
    assert out2.shape == (num2, prediction_dim[0])
    assert lat2.shape == (num2, prediction_dim[-1])
    # Tiled path accumulates sum/sumsq (E[x^2]-mean^2 variance) -> slightly looser.
    assert jnp.allclose(out2, ref_out2, atol=1e-3, rtol=1e-3)
    assert jnp.allclose(lat2, ref_lat2, atol=1e-3, rtol=1e-3)
    assert jnp.allclose(jnp.sum(out2, axis=1), 1.0, atol=1e-5)

    # ---- bf16 MXU-operand / bf16-activation fast path (v6e/v7x), looser tolerance ----
    out3, lat3 = prediction_forward(x2, params, prediction_dim,
                                    use_tiled=True, row_tile=512, use_bf16=True)
    jax.block_until_ready((out3, lat3))
    assert jnp.allclose(out3, ref_out2, atol=5e-2, rtol=5e-2)
    assert jnp.allclose(lat3, ref_lat2, atol=5e-2, rtol=5e-2)

    print("KERNEL_OK")
</pallas_src>

<mosaic_0001>
module attributes {stable_mosaic.version = 11 : i64} {
  func.func @kernel(%arg0: memref<8x128xf32, #tpu.memory_space<vmem>>, %arg1: memref<4x128x128xf32, #tpu.memory_space<vmem>>, %arg2: memref<4x3x128xf32, #tpu.memory_space<vmem>>, %arg3: memref<8x128xf32, #tpu.memory_space<vmem>>, %arg4: memref<8x128xf32, #tpu.memory_space<vmem>>) attributes {dimension_semantics = [], scalar_prefetch = 0 : i64, scratch_operands = 0 : i64, tpu.core_type = #tpu.core_type<tc>} {
    %c0 = arith.constant 0 : index
    %c0_0 = arith.constant 0 : index
    %0 = vector.load %arg0[%c0, %c0_0] : memref<8x128xf32, #tpu.memory_space<vmem>>, vector<8x128xf32>
    %cst = arith.constant 1.000000e+00 : f32
    %1 = vector.broadcast %cst : f32 to vector<1x8xf32>
    %c0_1 = arith.constant 0 : index
    %c0_2 = arith.constant 0 : index
    %c0_3 = arith.constant 0 : index
    %2 = vector.load %arg2[%c0_1, %c0_2, %c0_3] : memref<4x3x128xf32, #tpu.memory_space<vmem>>, vector<1x3x128xf32>
    %3 = vector.shape_cast %2 : vector<1x3x128xf32> to vector<3x128xf32>
    %4 = vector.extract_strided_slice %3 {offsets = [0, 0], sizes = [1, 128], strides = [1, 1]} : vector<3x128xf32> to vector<1x128xf32>
    %5 = vector.extract_strided_slice %3 {offsets = [1, 0], sizes = [1, 128], strides = [1, 1]} : vector<3x128xf32> to vector<1x128xf32>
    %6 = vector.extract_strided_slice %3 {offsets = [2, 0], sizes = [1, 128], strides = [1, 1]} : vector<3x128xf32> to vector<1x128xf32>
    %c0_4 = arith.constant 0 : index
    %c0_5 = arith.constant 0 : index
    %c0_6 = arith.constant 0 : index
    %7 = vector.load %arg1[%c0_4, %c0_5, %c0_6] : memref<4x128x128xf32, #tpu.memory_space<vmem>>, vector<1x128x128xf32>
    %8 = vector.shape_cast %7 : vector<1x128x128xf32> to vector<128x128xf32>
    %cst_7 = arith.constant dense<0.000000e+00> : vector<8x128xf32>
    %9 = tpu.matmul %0, %8, %cst_7 {dimension_numbers = #tpu.dot_dimension_numbers<[1], [0], [0], [1], [0, 0, 1, 1], [], []>} : vector<8x128xf32>, vector<128x128xf32>, vector<8x128xf32> -> vector<8x128xf32>
    %10 = vector.broadcast %4 : vector<1x128xf32> to vector<8x128xf32>
    %11 = arith.addf %9, %10 : vector<8x128xf32>
    %cst_8 = arith.constant dense<0.000000e+00> : vector<1x128xf32>
    %12 = tpu.matmul %1, %11, %cst_8 {dimension_numbers = #tpu.dot_dimension_numbers<[1], [0], [0], [1], [0, 0, 1, 1], [], []>} : vector<1x8xf32>, vector<8x128xf32>, vector<1x128xf32> -> vector<1x128xf32>
    %cst_9 = arith.constant 1.250000e-01 : f32
    %13 = vector.broadcast %cst_9 : f32 to vector<1x128xf32>
    %14 = arith.mulf %12, %13 : vector<1x128xf32>
    %15 = vector.broadcast %14 : vector<1x128xf32> to vector<8x128xf32>
    %16 = arith.subf %11, %15 : vector<8x128xf32>
    %17 = arith.mulf %16, %16 : vector<8x128xf32>
    %cst_10 = arith.constant dense<0.000000e+00> : vector<1x128xf32>
    %18 = tpu.matmul %1, %17, %cst_10 {dimension_numbers = #tpu.dot_dimension_numbers<[1], [0], [0], [1], [0, 0, 1, 1], [], []>} : vector<1x8xf32>, vector<8x128xf32>, vector<1x128xf32> -> vector<1x128xf32>
    %cst_11 = arith.constant 1.250000e-01 : f32
    %19 = vector.broadcast %cst_11 : f32 to vector<1x128xf32>
    %20 = arith.mulf %18, %19 : vector<1x128xf32>
    %cst_12 = arith.constant 9.99999974E-6 : f32
    %21 = vector.broadcast %cst_12 : f32 to vector<1x128xf32>
    %22 = arith.addf %20, %21 : vector<1x128xf32>
    %23 = math.rsqrt %22 : vector<1x128xf32>
    %24 = arith.mulf %5, %23 : vector<1x128xf32>
    %25 = vector.broadcast %24 : vector<1x128xf32> to vector<8x128xf32>
    %26 = arith.mulf %16, %25 : vector<8x128xf32>
    %27 = vector.broadcast %6 : vector<1x128xf32> to vector<8x128xf32>
    %28 = arith.addf %26, %27 : vector<8x128xf32>
    %cst_13 = arith.constant 0.000000e+00 : f32
    %29 = vector.broadcast %cst_13 : f32 to vector<8x128xf32>
    %30 = arith.maximumf %28, %29 : vector<8x128xf32>
    %c1 = arith.constant 1 : index
    %c0_14 = arith.constant 0 : index
    %c0_15 = arith.constant 0 : index
    %31 = vector.load %arg2[%c1, %c0_14, %c0_15] : memref<4x3x128xf32, #tpu.memory_space<vmem>>, vector<1x3x128xf32>
    %32 = vector.shape_cast %31 : vector<1x3x128xf32> to vector<3x128xf32>
    %33 = vector.extract_strided_slice %32 {offsets = [0, 0], sizes = [1, 128], strides = [1, 1]} : vector<3x128xf32> to vector<1x128xf32>
    %34 = vector.extract_strided_slice %32 {offsets = [1, 0], sizes = [1, 128], strides = [1, 1]} : vector<3x128xf32> to vector<1x128xf32>
    %35 = vector.extract_strided_slice %32 {offsets = [2, 0], sizes = [1, 128], strides = [1, 1]} : vector<3x128xf32> to vector<1x128xf32>
    %c1_16 = arith.constant 1 : index
    %c0_17 = arith.constant 0 : index
    %c0_18 = arith.constant 0 : index
    %36 = vector.load %arg1[%c1_16, %c0_17, %c0_18] : memref<4x128x128xf32, #tpu.memory_space<vmem>>, vector<1x128x128xf32>
    %37 = vector.shape_cast %36 : vector<1x128x128xf32> to vector<128x128xf32>
    %cst_19 = arith.constant dense<0.000000e+00> : vector<8x128xf32>
    %38 = tpu.matmul %30, %37, %cst_19 {dimension_numbers = #tpu.dot_dimension_numbers<[1], [0], [0], [1], [0, 0, 1, 1], [], []>} : vector<8x128xf32>, vector<128x128xf32>, vector<8x128xf32> -> vector<8x128xf32>
    %39 = vector.broadcast %33 : vector<1x128xf32> to vector<8x128xf32>
    %40 = arith.addf %38, %39 : vector<8x128xf32>
    %cst_20 = arith.constant dense<0.000000e+00> : vector<1x128xf32>
    %41 = tpu.matmul %1, %40, %cst_20 {dimension_numbers = #tpu.dot_dimension_numbers<[1], [0], [0], [1], [0, 0, 1, 1], [], []>} : vector<1x8xf32>, vector<8x128xf32>, vector<1x128xf32> -> vector<1x128xf32>
    %cst_21 = arith.constant 1.250000e-01 : f32
    %42 = vector.broadcast %cst_21 : f32 to vector<1x128xf32>
    %43 = arith.mulf %41, %42 : vector<1x128xf32>
    %44 = vector.broadcast %43 : vector<1x128xf32> to vector<8x128xf32>
    %45 = arith.subf %40, %44 : vector<8x128xf32>
    %46 = arith.mulf %45, %45 : vector<8x128xf32>
    %cst_22 = arith.constant dense<0.000000e+00> : vector<1x128xf32>
    %47 = tpu.matmul %1, %46, %cst_22 {dimension_numbers = #tpu.dot_dimension_numbers<[1], [0], [0], [1], [0, 0, 1, 1], [], []>} : vector<1x8xf32>, vector<8x128xf32>, vector<1x128xf32> -> vector<1x128xf32>
    %cst_23 = arith.constant 1.250000e-01 : f32
    %48 = vector.broadcast %cst_23 : f32 to vector<1x128xf32>
    %49 = arith.mulf %47, %48 : vector<1x128xf32>
    %cst_24 = arith.constant 9.99999974E-6 : f32
    %50 = vector.broadcast %cst_24 : f32 to vector<1x128xf32>
    %51 = arith.addf %49, %50 : vector<1x128xf32>
    %52 = math.rsqrt %51 : vector<1x128xf32>
    %53 = arith.mulf %34, %52 : vector<1x128xf32>
    %54 = vector.broadcast %53 : vector<1x128xf32> to vector<8x128xf32>
    %55 = arith.mulf %45, %54 : vector<8x128xf32>
    %56 = vector.broadcast %35 : vector<1x128xf32> to vector<8x128xf32>
    %57 = arith.addf %55, %56 : vector<8x128xf32>
    %cst_25 = arith.constant 0.000000e+00 : f32
    %58 = vector.broadcast %cst_25 : f32 to vector<8x128xf32>
    %59 = arith.maximumf %57, %58 : vector<8x128xf32>
    %c0_26 = arith.constant 0 : index
    %c0_27 = arith.constant 0 : index
    %60 = vector.load %arg4[%c0_26, %c0_27] : memref<8x128xf32, #tpu.memory_space<vmem>>, vector<8x128xf32>
    tpu.vector_store %arg4[%c0_26, %c0_27], %59 {strides = array<i32>} : memref<8x128xf32, #tpu.memory_space<vmem>>, vector<8x128xf32>,
    %c2 = arith.constant 2 : index
    %c0_28 = arith.constant 0 : index
    %c0_29 = arith.constant 0 : index
    %61 = vector.load %arg2[%c2, %c0_28, %c0_29] : memref<4x3x128xf32, #tpu.memory_space<vmem>>, vector<1x3x128xf32>
    %62 = vector.shape_cast %61 : vector<1x3x128xf32> to vector<3x128xf32>
    %63 = vector.extract_strided_slice %62 {offsets = [0, 0], sizes = [1, 128], strides = [1, 1]} : vector<3x128xf32> to vector<1x128xf32>
    %64 = vector.extract_strided_slice %62 {offsets = [1, 0], sizes = [1, 128], strides = [1, 1]} : vector<3x128xf32> to vector<1x128xf32>
    %65 = vector.extract_strided_slice %62 {offsets = [2, 0], sizes = [1, 128], strides = [1, 1]} : vector<3x128xf32> to vector<1x128xf32>
    %c2_30 = arith.constant 2 : index
    %c0_31 = arith.constant 0 : index
    %c0_32 = arith.constant 0 : index
    %66 = vector.load %arg1[%c2_30, %c0_31, %c0_32] : memref<4x128x128xf32, #tpu.memory_space<vmem>>, vector<1x128x128xf32>
    %67 = vector.shape_cast %66 : vector<1x128x128xf32> to vector<128x128xf32>
    %cst_33 = arith.constant dense<0.000000e+00> : vector<8x128xf32>
    %68 = tpu.matmul %59, %67, %cst_33 {dimension_numbers = #tpu.dot_dimension_numbers<[1], [0], [0], [1], [0, 0, 1, 1], [], []>} : vector<8x128xf32>, vector<128x128xf32>, vector<8x128xf32> -> vector<8x128xf32>
    %69 = vector.broadcast %63 : vector<1x128xf32> to vector<8x128xf32>
    %70 = arith.addf %68, %69 : vector<8x128xf32>
    %cst_34 = arith.constant dense<0.000000e+00> : vector<1x128xf32>
    %71 = tpu.matmul %1, %70, %cst_34 {dimension_numbers = #tpu.dot_dimension_numbers<[1], [0], [0], [1], [0, 0, 1, 1], [], []>} : vector<1x8xf32>, vector<8x128xf32>, vector<1x128xf32> -> vector<1x128xf32>
    %cst_35 = arith.constant 1.250000e-01 : f32
    %72 = vector.broadcast %cst_35 : f32 to vector<1x128xf32>
    %73 = arith.mulf %71, %72 : vector<1x128xf32>
    %74 = vector.broadcast %73 : vector<1x128xf32> to vector<8x128xf32>
    %75 = arith.subf %70, %74 : vector<8x128xf32>
    %76 = arith.mulf %75, %75 : vector<8x128xf32>
    %cst_36 = arith.constant dense<0.000000e+00> : vector<1x128xf32>
    %77 = tpu.matmul %1, %76, %cst_36 {dimension_numbers = #tpu.dot_dimension_numbers<[1], [0], [0], [1], [0, 0, 1, 1], [], []>} : vector<1x8xf32>, vector<8x128xf32>, vector<1x128xf32> -> vector<1x128xf32>
    %cst_37 = arith.constant 1.250000e-01 : f32
    %78 = vector.broadcast %cst_37 : f32 to vector<1x128xf32>
    %79 = arith.mulf %77, %78 : vector<1x128xf32>
    %cst_38 = arith.constant 9.99999974E-6 : f32
    %80 = vector.broadcast %cst_38 : f32 to vector<1x128xf32>
    %81 = arith.addf %79, %80 : vector<1x128xf32>
    %82 = math.rsqrt %81 : vector<1x128xf32>
    %83 = arith.mulf %64, %82 : vector<1x128xf32>
    %84 = vector.broadcast %83 : vector<1x128xf32> to vector<8x128xf32>
    %85 = arith.mulf %75, %84 : vector<8x128xf32>
    %86 = vector.broadcast %65 : vector<1x128xf32> to vector<8x128xf32>
    %87 = arith.addf %85, %86 : vector<8x128xf32>
    %cst_39 = arith.constant 0.000000e+00 : f32
    %88 = vector.broadcast %cst_39 : f32 to vector<8x128xf32>
    %89 = arith.maximumf %87, %88 : vector<8x128xf32>
    %c3 = arith.constant 3 : index
    %c0_40 = arith.constant 0 : index
    %c0_41 = arith.constant 0 : index
    %90 = vector.load %arg2[%c3, %c0_40, %c0_41] : memref<4x3x128xf32, #tpu.memory_space<vmem>>, vector<1x3x128xf32>
    %91 = vector.shape_cast %90 : vector<1x3x128xf32> to vector<3x128xf32>
    %92 = vector.extract_strided_slice %91 {offsets = [0, 0], sizes = [1, 128], strides = [1, 1]} : vector<3x128xf32> to vector<1x128xf32>
    %c3_42 = arith.constant 3 : index
    %c0_43 = arith.constant 0 : index
    %c0_44 = arith.constant 0 : index
    %93 = vector.load %arg1[%c3_42, %c0_43, %c0_44] : memref<4x128x128xf32, #tpu.memory_space<vmem>>, vector<1x128x128xf32>
    %94 = vector.shape_cast %93 : vector<1x128x128xf32> to vector<128x128xf32>
    %cst_45 = arith.constant dense<0.000000e+00> : vector<8x128xf32>
    %95 = tpu.matmul %89, %94, %cst_45 {dimension_numbers = #tpu.dot_dimension_numbers<[1], [0], [0], [1], [0, 0, 1, 1], [], []>} : vector<8x128xf32>, vector<128x128xf32>, vector<8x128xf32> -> vector<8x128xf32>
    %96 = vector.broadcast %92 : vector<1x128xf32> to vector<8x128xf32>
    %97 = arith.addf %95, %96 : vector<8x128xf32>
    %98 = tpu.iota {dimensions = array<i32: 1>} : vector<8x128xi32>
    %c32_i32 = arith.constant 32 : i32
    %99 = vector.broadcast %c32_i32 : i32 to vector<8x128xi32>
    %100 = arith.cmpi slt, %98, %99 : vector<8x128xi32>
    %cst_46 = arith.constant -1.000000e+30 : f32
    %101 = vector.broadcast %cst_46 : f32 to vector<8x128xf32>
    %102 = arith.select %100, %97, %101 : vector<8x128xi1>, vector<8x128xf32>
    %cst_47 = arith.constant dense<0xFF800000> : vector<8xf32>
    %103 = vector.multi_reduction <maximumf>, %102, %cst_47 [1] : vector<8x128xf32> to vector<8xf32>
    %104 = vector.shape_cast %103 : vector<8xf32> to vector<8x1xf32>
    %105 = vector.broadcast %104 : vector<8x1xf32> to vector<8x128xf32>
    %106 = arith.subf %102, %105 : vector<8x128xf32>
    %107 = math.exp %106 : vector<8x128xf32>
    %cst_48 = arith.constant 0.000000e+00 : f32
    %108 = vector.broadcast %cst_48 : f32 to vector<8x128xf32>
    %109 = arith.select %100, %107, %108 : vector<8x128xi1>, vector<8x128xf32>
    %cst_49 = arith.constant dense<0.000000e+00> : vector<8xf32>
    %110 = vector.multi_reduction <add>, %109, %cst_49 [1] : vector<8x128xf32> to vector<8xf32>
    %111 = vector.shape_cast %110 : vector<8xf32> to vector<8x1xf32>
    %112 = tpu.reciprocal %111 : vector<8x1xf32> -> vector<8x1xf32>
    %113 = vector.broadcast %112 : vector<8x1xf32> to vector<8x128xf32>
    %114 = arith.mulf %109, %113 : vector<8x128xf32>
    %c0_50 = arith.constant 0 : index
    %c0_51 = arith.constant 0 : index
    %115 = vector.load %arg3[%c0_50, %c0_51] : memref<8x128xf32, #tpu.memory_space<vmem>>, vector<8x128xf32>
    tpu.vector_store %arg3[%c0_50, %c0_51], %114 {strides = array<i32>} : memref<8x128xf32, #tpu.memory_space<vmem>>, vector<8x128xf32>,
    return
  }
}

</mosaic_0001>

<bundles_post_ra>
// kernel: prediction_forward.1
= control target key start
LH: loop header
LB: loop body
LE: loop exit
PB: predicated region body
PF: predicated region fallthrough
CT: control target
= control target key end

     0   :  { %10 = vsyncpa [#allocation3], 0  ;;  %s1589_s0 = inlined_call_operand.vmem [shape: f32[8,128], index: 0, kind: input, shape index: {}]   ;;  %s1590_s1 = inlined_call_operand.hbm [shape: f32[4,128,128], index: 1, kind: input, shape index: {}]   ;;  %s1591_s2 = inlined_call_operand.vmem [shape: f32[4,3,128], index: 2, kind: input, shape index: {}]   ;;  %s1592_s3 = inlined_call_operand.hbm [shape: f32[8,128], index: 3, kind: output, shape index: {0}]   ;;  %s1593_s4 = inlined_call_operand.hbm [shape: f32[8,128], index: 4, kind: output, shape index: {1}]  }
   0x1   :  { %11 = vsyncpa [#allocation4], 0 }
   0x2   :  { %12 = vsyncpa [#allocation7], 0  ;;  %s1393_s15 = smov [#allocation2]   ;;  %s1321_s19 = scalar_lea.hbm %s1590_s1, 8192 }
   0x3   :  { %s20_s16 = sshll.u32 %s1393_s15, 4  ;;  %p1322_p0 = scmp.ne.s32.totalorder %s1590_s1, %s1321_s19  ;;  %s21_s16 = int_to_ptr.vmem [resolvable:$true] %s20_s16 }
   0x4   :  { %p1325_p1 = scmp.lt.u32.totalorder %s1321_s19, %s1590_s1 }
   0x6   :  { %p1327_p2 = pnand %p1325_p1, %p1322_p0 }
   0x8   :  { %1330 = shalt.err (!%p1327_p2)
}
   0x9   :  { %s1331_s24 = scalar_lea.vmem %s21_s16, 8192  ;;  %p1336_p4 = scmp.lt.s32.totalorder %s21_s16, %s21_s16 }
   0xa   :  { %p1332_p3 = scmp.ne.s32.totalorder %s21_s16, %s1331_s24  ;;  %p1337_p5 = scmp.lt.s32.totalorder %s1331_s24, %s1331_s24 }
   0xc   :  { %p1338_p6 = por %p1337_p5, %p1336_p4 }
   0xe   :  { %p1339_p7 = pnand %p1338_p6, %p1332_p3 }
  0x10   :  { %1342 = shalt.err (!%p1339_p7)
}
  0x11   :  { %s1394_s25 = smov 128   ;;  %s1395_s26 = smov 8  }
  0x12   :  { %26 = dma.hbm_to_vmem [thread:$0]  %s1590_s1, 8192, %s21_s16, [#allocation3], %s1394_s25, %s1394_s25, %s1395_s26  }
  0x13   :  { %1387 = dma.done.wait [#allocation3], 8192  }
  0x14   :  { %1388 = vsyncadd [#allocation3], 4294959104  ;;  %v1396_v0 = vmov 0.0|0.0   ;;  %vm1397_vm0 = vmmov 0   ;;  %v1398_v1 = vmov 0.0   ;;  %v34_v2 = vld [vmem:[#allocation2] sm:$0xff]  ;;  %v50_v27 = vlaneseq }
  0x15   :  { %1206 = vmatprep.subr.bf16.mxu0 %v1396_v0  ;;  %1068 = vmatprep.mubr.msk.f32.mxu0 %vm1397_vm0, %v1398_v1  ;;  %v35_v3 = vld [vmem:[#allocation2 + $0x8] sm:$0xff]  ;;  %v36_v4 = vld [vmem:[#allocation2 + $0x10] sm:$0xff]  ;;  %v37_v6 = vld [vmem:[#allocation2 + $0x18] sm:$0xff]  ;;  %vm124_vm1 = vcmask 64512   ;;  %v1399_v35 = vmov 1.0   ;;  %s1400_s11 = smov [#allocation6]  }
  0x16   :  { %1071 = vmatprep.subr.mxu1 %v1398_v1  ;;  %1073 = vmatprep.mubr.msk.f32.mxu1 %vm1397_vm0, %v1398_v1  ;;  %v1207_v5 = vpack.c.bf16 %v35_v3, %v34_v2  ;;  %v1210_v7 = vpack.c.bf16 %v37_v6, %v36_v4  ;;  %v38_v8 = vld [vmem:[#allocation2 + $0x20] sm:$0xff]  ;;  %v39_v9 = vld [vmem:[#allocation2 + $0x28] sm:$0xff]  ;;  %v40_v11 = vld [vmem:[#allocation2 + $0x30] sm:$0xff]  ;;  %v1459_v28 = vshrl.u32 %v50_v27, 7  ;;  %s934_s12 = sshll.u32 %s1400_s11, 4  ;;  %s935_s12 = int_to_ptr.vmem [resolvable:$true] %s934_s12 }
  0x17   :  { %v1213_v10 = vpack.c.bf16 %v39_v9, %v38_v8  ;;  %v41_v12 = vld [vmem:[#allocation2 + $0x38] sm:$0xff]  ;;  %v42_v14 = vld [vmem:[#allocation2 + $0x40] sm:$0xff]  ;;  %v43_v15 = vld [vmem:[#allocation2 + $0x48] sm:$0xff]  ;;  %p1348_p9 = scmp.lt.s32.totalorder %s935_s12, %s935_s12 }
  0x18   :  { %1208 = vmatpush3.bf16.msra.mxu0 %v1207_v5  ;;  %v1216_v13 = vpack.c.bf16 %v41_v12, %v40_v11  ;;  %v1219_v16 = vpack.c.bf16 %v43_v15, %v42_v14  ;;  %v44_v17 = vld [vmem:[#allocation2 + $0x50] sm:$0xff]  ;;  %v45_v18 = vld [vmem:[#allocation2 + $0x58] sm:$0xff]  ;;  %v46_v20 = vld [vmem:[#allocation2 + $0x60] sm:$0xff]  ;;  %v1462_v29 = vsub.s32 0, %v1459_v28  ;;  %v1491_v9 = vsub.s32 2, %v1459_v28 }
  0x19   :  { %1209 = vmatprep.subr.bf16.mxu0 %v1396_v0  ;;  %v1222_v19 = vpack.c.bf16 %v45_v18, %v44_v17  ;;  %v47_v21 = vld [vmem:[#allocation2 + $0x68] sm:$0xff]  ;;  %v48_v23 = vld [vmem:[#allocation2 + $0x70] sm:$0xff]  ;;  %v49_v24 = vld [vmem:[#allocation2 + $0x78] sm:$0xff]  ;;  %v1494_v11 = vsub.s32 1, %v1459_v28 }
  0x1a   :  { %v1225_v22 = vpack.c.bf16 %v47_v21, %v46_v20  ;;  %v1228_v25 = vpack.c.bf16 %v49_v24, %v48_v23  ;;  %v32_v26 = vld [vmem:[%s1589_s0] sm:$0xff]  ;;  %v296_v40 = vld [vmem:[#allocation2 + $0x80] sm:$0xff]  ;;  %v297_v41 = vld [vmem:[#allocation2 + $0x88] sm:$0xff] }
  0x1b   :  { %v1467_v30 = vld [vmem:[%s1591_s2] sm:$0x7]  ;;  %v1231_v44 = vpack.c.bf16 %v297_v41, %v296_v40  ;;  %v298_v45 = vld [vmem:[#allocation2 + $0x90] sm:$0xff]  ;;  %v300_v48 = vld [vmem:[#allocation2 + $0xa0] sm:$0xff] }
  0x1c   :  { %1211 = vmatpush3.bf16.msra.mxu0 %v1210_v7  ;;  %v53_v31 = vrot.slane %v1467_v30, %v1462_v29  ;;  %v299_v46 = vld [vmem:[#allocation2 + $0x98] sm:$0xff]  ;;  %v301_v49 = vld [vmem:[#allocation2 + $0xa8] sm:$0xff]  ;;  %v302_v51 = vld [vmem:[#allocation2 + $0xb0] sm:$0xff] }
  0x1d   :  { %1212 = vmatprep.subr.bf16.mxu0 %v1396_v0  ;;  %v1234_v47 = vpack.c.bf16 %v299_v46, %v298_v45  ;;  %v1237_v50 = vpack.c.bf16 %v301_v49, %v300_v48  ;;  %v303_v52 = vld [vmem:[#allocation2 + $0xb8] sm:$0xff]  ;;  %v304_v54 = vld [vmem:[#allocation2 + $0xc0] sm:$0xff]  ;;  %v305_v55 = vld [vmem:[#allocation2 + $0xc8] sm:$0xff] }
  0x1e   :  { %v1240_v53 = vpack.c.bf16 %v303_v52, %v302_v51  ;;  %v1243_v56 = vpack.c.bf16 %v305_v55, %v304_v54  ;;  %v306_v57 = vld [vmem:[#allocation2 + $0xd0] sm:$0xff]  ;;  %v307_v58 = vld [vmem:[#allocation2 + $0xd8] sm:$0xff]  ;;  %v308_v60 = vld [vmem:[#allocation2 + $0xe0] sm:$0xff] }
  0x1f   :  { %v1246_v59 = vpack.c.bf16 %v307_v58, %v306_v57  ;;  %v309_v61 = vld [vmem:[#allocation2 + $0xe8] sm:$0xff]  ;;  %v310_v63 = vld [vmem:[#allocation2 + $0xf0] sm:$0xff]  ;;  %v311_v2 = vld [vmem:[#allocation2 + $0xf8] sm:$0xff] }
  0x20   :  { %1214 = vmatpush3.bf16.msra.mxu0 %v1213_v10  ;;  %v1249_v62 = vpack.c.bf16 %v309_v61, %v308_v60  ;;  %v1252_v3 = vpack.c.bf16 %v311_v2, %v310_v63  ;;  %v1505_v18 = vld [vmem:[%s1591_s2 + $0x4] sm:$0x7]  ;;  %v555_v23 = vld [vmem:[#allocation2 + $0x100] sm:$0xff]  ;;  %v556_v24 = vld [vmem:[#allocation2 + $0x108] sm:$0xff] }
  0x21   :  { %1215 = vmatprep.subr.bf16.mxu0 %v1396_v0  ;;  %v561_v41 = vld [vmem:[#allocation2 + $0x130] sm:$0xff]  ;;  %v564_v45 = vld [vmem:[#allocation2 + $0x148] sm:$0xff]  ;;  %v566_v48 = vld [vmem:[#allocation2 + $0x158] sm:$0xff]  ;;  %v548_v63 = vrot.slane %v1505_v18, %v1491_v9 }
  0x22   :  { %v568_v51 = vld [vmem:[#allocation2 + $0x168] sm:$0xff]  ;;  %v570_v54 = vld [vmem:[#allocation2 + $0x178] sm:$0xff] }
  0x24   :  { %1217 = vmatpush3.bf16.msra.mxu0 %v1216_v13  ;;  %v290_v13 = vrot.slane %v1467_v30, %v1491_v9 }
  0x25   :  { %1218 = vmatprep.subr.bf16.mxu0 %v1396_v0 }
  0x28   :  { %1220 = vmatpush3.bf16.msra.mxu0 %v1219_v16 }
  0x29   :  { %1221 = vmatprep.subr.bf16.mxu0 %v1396_v0 }
  0x2c   :  { %1223 = vmatpush3.bf16.msra.mxu0 %v1222_v19  ;;  %v315_v19 = vrot.slane %v1505_v18, %v1462_v29 }
  0x2d   :  { %1224 = vmatprep.subr.bf16.mxu0 %v1396_v0 }
  0x30   :  { %1226 = vmatpush3.bf16.msra.mxu0 %v1225_v22 }
  0x31   :  { %1227 = vmatprep.subr.bf16.mxu0 %v1396_v0 }
  0x34   :  { %1229 = vmatpush3.bf16.msra.mxu0 %v1228_v25  ;;  %v1255_v25 = vpack.c.bf16 %v556_v24, %v555_v23  ;;  %v816_v23 = vld [vmem:[#allocation2 + $0x198] sm:$0xff] }
  0x35   :  { %1121 = vmatprep.subr.mxu0 %v1398_v1 }
  0x37   :  { %1069 = vmatmul.mubr.f32.vlgmr.msra.gmra.mrb[0].mxu0 %v32_v26 }
  0x38   :  { %1123 = vmatprep.mubr.msk.f32.mxu0 %vm1397_vm0, %v1398_v1 }
 0x10a   :  { %v120_v32 = vpop.f32.mrb[0].mxu0 }
 0x10b   :  { %v121_v33 = vadd.f32 %v120_v32, %v53_v31  ;;  %v1070_v34 = vpop.f32.mrb[1].mxu0 }
 0x10c   :  { %v557_v34 = vld [vmem:[#allocation2 + $0x110] sm:$0xff] }
 0x10d   :  { %1072 = vmatpush3.msra.mxu1 %v121_v33 }
 0x10e   :  { %1074 = vmatmul.mubr.msk.f32.vlgmr.msra.gmra.mrb[0].mxu1 %vm124_vm1, %v1399_v35  ;;  %1076 = vmatprep.subr.mxu1 %v1398_v1 }
 0x10f   :  { %1078 = vmatprep.mubr.msk.f32.mxu1 %vm1397_vm0, %v1398_v1 }
 0x1e1   :  { %v194_v36 = vpop.f32.mrb[0].mxu1 }
 0x1e2   :  { %v198_v37 = vmul.f32 0.125, %v194_v36  ;;  %v1075_v38 = vpop.f32.mrb[1].mxu1  ;;  %v558_v36 = vld [vmem:[#allocation2 + $0x118] sm:$0xff] }
 0x1e3   :  { %v559_v38 = vld [vmem:[#allocation2 + $0x120] sm:$0xff] }
 0x1e4   :  { %v202_v39 = vrot.slane %v198_v37, %v1462_v29  ;;  %v1258_v37 = vpack.c.bf16 %v558_v36, %v557_v34  ;;  %v823_v34 = vld [vmem:[#allocation2 + $0x1d0] sm:$0xff]  ;;  %v824_v36 = vld [vmem:[#allocation2 + $0x1d8] sm:$0xff] }
 0x1e6   :  { %v203_v42 = vsub.f32 %v121_v33, %v202_v39  ;;  %v560_v39 = vld [vmem:[#allocation2 + $0x128] sm:$0xff] }
 0x1e7   :  { %v1261_v40 = vpack.c.bf16 %v560_v39, %v559_v38  ;;  %v825_v38 = vld [vmem:[#allocation2 + $0x1e0] sm:$0xff]  ;;  %v826_v39 = vld [vmem:[#allocation2 + $0x1e8] sm:$0xff] }
 0x1e8   :  { %v204_v43 = vmul.f32 %v203_v42, %v203_v42 }
 0x1ea   :  { %1077 = vmatpush3.msra.mxu1 %v204_v43 }
 0x1eb   :  { %1079 = vmatmul.mubr.msk.f32.vlgmr.msra.gmra.mrb[2].mxu1 %vm124_vm1, %v1399_v35  ;;  %1230 = vmatprep.subr.bf16.mxu1 %v1396_v0 }
 0x1ec   :  { %1232 = vmatpush3.bf16.msra.mxu1 %v1231_v44  ;;  %1113 = vmatprep.mubr.msk.f32.mxu1 %vm1397_vm0, %v1398_v1  ;;  %v563_v44 = vld [vmem:[#allocation2 + $0x140] sm:$0xff] }
 0x1ed   :  { %1233 = vmatprep.subr.bf16.mxu1 %v1396_v0  ;;  %v1267_v46 = vpack.c.bf16 %v564_v45, %v563_v44 }
 0x1f0   :  { %1235 = vmatpush3.bf16.msra.mxu1 %v1234_v47  ;;  %v565_v47 = vld [vmem:[#allocation2 + $0x150] sm:$0xff] }
 0x1f1   :  { %1236 = vmatprep.subr.bf16.mxu1 %v1396_v0  ;;  %v1270_v49 = vpack.c.bf16 %v566_v48, %v565_v47 }
 0x1f4   :  { %1238 = vmatpush3.bf16.msra.mxu1 %v1237_v50  ;;  %v567_v50 = vld [vmem:[#allocation2 + $0x160] sm:$0xff] }
 0x1f5   :  { %1239 = vmatprep.subr.bf16.mxu1 %v1396_v0  ;;  %v1273_v52 = vpack.c.bf16 %v568_v51, %v567_v50 }
 0x1f8   :  { %1241 = vmatpush3.bf16.msra.mxu1 %v1240_v53  ;;  %v569_v53 = vld [vmem:[#allocation2 + $0x170] sm:$0xff] }
 0x1f9   :  { %1242 = vmatprep.subr.bf16.mxu1 %v1396_v0  ;;  %v1276_v55 = vpack.c.bf16 %v570_v54, %v569_v53 }
 0x1fc   :  { %1244 = vmatpush3.bf16.msra.mxu1 %v1243_v56 }
 0x1fd   :  { %1245 = vmatprep.subr.bf16.mxu1 %v1396_v0 }
 0x200   :  { %1247 = vmatpush3.bf16.msra.mxu1 %v1246_v59 }
 0x201   :  { %1248 = vmatprep.subr.bf16.mxu1 %v1396_v0 }
 0x204   :  { %1250 = vmatpush3.bf16.msra.mxu1 %v1249_v62 }
 0x205   :  { %1251 = vmatprep.subr.bf16.mxu1 %v1396_v0 }
 0x208   :  { %1253 = vmatpush3.bf16.msra.mxu1 %v1252_v3 }
 0x209   :  { %1116 = vmatprep.subr.mxu1 %v1398_v1 }
 0x2be   :  { %v271_v4 = vpop.f32.mrb[2].mxu1 }
 0x2bf   :  { %v275_v5 = vmul.f32 0.125, %v271_v4  ;;  %v1080_v6 = vpop.f32.mrb[3].mxu1 }
 0x2c0   :  { %v1534_v6 = vld [vmem:[%s1591_s2 + $0x8] sm:$0x7] }
 0x2c1   :  { %v276_v7 = vadd.f32 1e-05, %v275_v5  ;;  %v807_v51 = vrot.slane %v1534_v6, %v1491_v9 }
 0x2c3   :  { %1311 = vrsqrt.f32 %v276_v7  ;;  %v574_v7 = vrot.slane %v1534_v6, %v1462_v29 }
 0x2cd   :  { %v1312_v8 = vpop.eup %1311 }
 0x2ce   :  { %v279_v10 = vrot.slane %v1312_v8, 7 }
 0x2d0   :  { %v281_v12 = vmul.f32 %v279_v10, %v1467_v30 }
 0x2d2   :  { %v285_v14 = vrot.slane %v281_v12, %v1494_v11 }
 0x2d4   :  { %v286_v15 = vmul.f32 %v285_v14, %v203_v42  ;;  %v562_v42 = vld [vmem:[#allocation2 + $0x138] sm:$0xff] }
 0x2d5   :  { %v1264_v43 = vpack.c.bf16 %v562_v42, %v561_v41  ;;  %v827_v41 = vld [vmem:[#allocation2 + $0x1f0] sm:$0xff]  ;;  %v828_v42 = vld [vmem:[#allocation2 + $0x1f8] sm:$0xff] }
 0x2d6   :  { %v291_v16 = vadd.f32 %v290_v13, %v286_v15 }
 0x2d8   :  { %v292_v17 = vmax.f32 %v291_v16, 0.0 }
 0x2da   :  { %1114 = vmatmul.mubr.f32.vlgmr.msra.gmra.mrb[4].mxu1 %v292_v17  ;;  %v813_v17 = vld [vmem:[#allocation2 + $0x180] sm:$0xff] }
 0x2db   :  { %1118 = vmatprep.mubr.msk.f32.mxu1 %vm1397_vm0, %v1398_v1 }
 0x3ad   :  { %v382_v20 = vpop.f32.mrb[4].mxu1 }
 0x3ae   :  { %v383_v21 = vadd.f32 %v382_v20, %v315_v19  ;;  %v1115_v22 = vpop.f32.mrb[5].mxu1 }
 0x3af   :  { %v815_v22 = vld [vmem:[#allocation2 + $0x190] sm:$0xff] }
 0x3b0   :  { %1117 = vmatpush3.msra.mxu1 %v383_v21  ;;  %v1282_v24 = vpack.c.bf16 %v816_v23, %v815_v22 }
 0x3b1   :  { %1119 = vmatmul.mubr.msk.f32.vlgmr.msra.gmra.mrb[6].mxu1 %vm124_vm1, %v1399_v35  ;;  %1254 = vmatprep.subr.bf16.mxu1 %v1396_v0 }
 0x3b2   :  { %1158 = vmatprep.mubr.msk.f32.mxu1 %vm1397_vm0, %v1398_v1  ;;  %1256 = vmatpush3.bf16.msra.mxu1 %v1255_v25  ;;  %v817_v25 = vld [vmem:[#allocation2 + $0x1a0] sm:$0xff] }
 0x3b3   :  { %1257 = vmatprep.subr.bf16.mxu1 %v1396_v0 }
 0x3b6   :  { %1259 = vmatpush3.bf16.msra.mxu1 %v1258_v37  ;;  %v1294_v37 = vpack.c.bf16 %v824_v36, %v823_v34 }
 0x3b7   :  { %1260 = vmatprep.subr.bf16.mxu1 %v1396_v0 }
 0x3ba   :  { %1262 = vmatpush3.bf16.msra.mxu1 %v1261_v40  ;;  %v1297_v40 = vpack.c.bf16 %v826_v39, %v825_v38 }
 0x3bb   :  { %1263 = vmatprep.subr.bf16.mxu1 %v1396_v0 }
 0x3be   :  { %1265 = vmatpush3.bf16.msra.mxu1 %v1264_v43  ;;  %v1300_v43 = vpack.c.bf16 %v828_v42, %v827_v41 }
 0x3bf   :  { %1266 = vmatprep.subr.bf16.mxu1 %v1396_v0 }
 0x3c2   :  { %1268 = vmatpush3.bf16.msra.mxu1 %v1267_v46 }
 0x3c3   :  { %1269 = vmatprep.subr.bf16.mxu1 %v1396_v0 }
 0x3c6   :  { %1271 = vmatpush3.bf16.msra.mxu1 %v1270_v49 }
 0x3c7   :  { %1272 = vmatprep.subr.bf16.mxu1 %v1396_v0 }
 0x3ca   :  { %1274 = vmatpush3.bf16.msra.mxu1 %v1273_v52 }
 0x3cb   :  { %1275 = vmatprep.subr.bf16.mxu1 %v1396_v0 }
 0x3ce   :  { %1277 = vmatpush3.bf16.msra.mxu1 %v1276_v55 }
 0x484   :  { %v452_v26 = vpop.f32.mrb[6].mxu1 }
 0x485   :  { %v456_v28 = vmul.f32 0.125, %v452_v26  ;;  %v1120_v30 = vpop.f32.mrb[7].mxu1  ;;  %v818_v26 = vld [vmem:[#allocation2 + $0x1a8] sm:$0xff] }
 0x486   :  { %v820_v30 = vld [vmem:[#allocation2 + $0x1b8] sm:$0xff] }
 0x487   :  { %v460_v31 = vrot.slane %v456_v28, %v1462_v29  ;;  %v1285_v28 = vpack.c.bf16 %v818_v26, %v817_v25 }
 0x489   :  { %v461_v32 = vsub.f32 %v383_v21, %v460_v31 }
 0x48b   :  { %v462_v33 = vmul.f32 %v461_v32, %v461_v32 }
 0x48d   :  { %1122 = vmatpush3.msra.mxu0 %v462_v33 }
 0x48e   :  { %1124 = vmatmul.mubr.msk.f32.vlgmr.msra.gmra.mrb[2].mxu0 %vm124_vm1, %v1399_v35  ;;  %1161 = vmatprep.subr.mxu0 %v1398_v1 }
 0x48f   :  { %1163 = vmatprep.mubr.msk.f32.mxu0 %vm1397_vm0, %v1398_v1 }
 0x561   :  { %v529_v56 = vpop.f32.mrb[2].mxu0 }
 0x562   :  { %v533_v57 = vmul.f32 0.125, %v529_v56  ;;  %v1125_v58 = vpop.f32.mrb[3].mxu0  ;;  %v904_v56 = vand.u32 127, %v50_v27 }
 0x564   :  { %v534_v59 = vadd.f32 1e-05, %v533_v57  ;;  %vm905_vm2 = vcmp.lt.s32.totalorder %v904_v56, 32 }
 0x566   :  { %1313 = vrsqrt.f32 %v534_v59 }
 0x570   :  { %v1314_v60 = vpop.eup %1313 }
 0x571   :  { %v537_v61 = vrot.slane %v1314_v60, 7 }
 0x573   :  { %v539_v62 = vmul.f32 %v1505_v18, %v537_v61  ;;  %v814_v18 = vld [vmem:[#allocation2 + $0x188] sm:$0xff] }
 0x574   :  { %v1279_v21 = vpack.c.bf16 %v814_v18, %v813_v17 }
 0x575   :  { %v543_v2 = vrot.slane %v539_v62, %v1494_v11 }
 0x577   :  { %v544_v3 = vmul.f32 %v543_v2, %v461_v32  ;;  %v822_v32 = vld [vmem:[#allocation2 + $0x1c8] sm:$0xff] }
 0x579   :  { %v549_v4 = vadd.f32 %v548_v63, %v544_v3 }
 0x57b   :  { %v550_v5 = vmax.f32 %v549_v4, 0.0 }
 0x57d   :  { %1159 = vmatmul.mubr.f32.vlgmr.msra.gmra.mrb[8].mxu1 %v550_v5  ;;  %551 = vst [vmem:[#allocation6] sm:$0xff] %v550_v5 }
 0x650   :  { %v641_v8 = vpop.f32.mrb[8].mxu1 }
 0x651   :  { %v642_v10 = vadd.f32 %v641_v8, %v574_v7  ;;  %v1160_v12 = vpop.f32.mrb[9].mxu1 }
 0x653   :  { %1162 = vmatpush3.msra.mxu0 %v642_v10 }
 0x654   :  { %1164 = vmatmul.mubr.msk.f32.vlgmr.msra.gmra.mrb[4].mxu0 %vm124_vm1, %v1399_v35  ;;  %1166 = vmatprep.subr.mxu0 %v1398_v1 }
 0x655   :  { %1168 = vmatprep.mubr.msk.f32.mxu0 %vm1397_vm0, %v1398_v1 }
 0x727   :  { %v711_v13 = vpop.f32.mrb[4].mxu0 }
 0x728   :  { %v715_v14 = vmul.f32 0.125, %v711_v13  ;;  %v1165_v15 = vpop.f32.mrb[5].mxu0 }
 0x72a   :  { %v719_v16 = vrot.slane %v715_v14, %v1462_v29 }
 0x72c   :  { %v720_v19 = vsub.f32 %v642_v10, %v719_v16 }
 0x72e   :  { %v721_v20 = vmul.f32 %v720_v19, %v720_v19 }
 0x730   :  { %1167 = vmatpush3.msra.mxu0 %v721_v20 }
 0x731   :  { %1169 = vmatmul.mubr.msk.f32.vlgmr.msra.gmra.mrb[6].mxu0 %vm124_vm1, %v1399_v35  ;;  %1278 = vmatprep.subr.bf16.mxu0 %v1396_v0  ;;  %v819_v35 = vld [vmem:[#allocation2 + $0x1b0] sm:$0xff] }
 0x732   :  { %1280 = vmatpush3.bf16.msra.mxu0 %v1279_v21  ;;  %1203 = vmatprep.mubr.msk.f32.mxu0 %vm1397_vm0, %v1398_v1  ;;  %v1288_v31 = vpack.c.bf16 %v820_v30, %v819_v35  ;;  %v821_v1 = vld [vmem:[#allocation2 + $0x1c0] sm:$0xff] }
 0x733   :  { %1281 = vmatprep.subr.bf16.mxu0 %v1396_v0  ;;  %v1291_v33 = vpack.c.bf16 %v822_v32, %v821_v1 }
 0x736   :  { %1283 = vmatpush3.bf16.msra.mxu0 %v1282_v24 }
 0x737   :  { %1284 = vmatprep.subr.bf16.mxu0 %v1396_v0 }
 0x73a   :  { %1286 = vmatpush3.bf16.msra.mxu0 %v1285_v28 }
 0x73b   :  { %1287 = vmatprep.subr.bf16.mxu0 %v1396_v0 }
 0x73e   :  { %1289 = vmatpush3.bf16.msra.mxu0 %v1288_v31 }
 0x73f   :  { %1290 = vmatprep.subr.bf16.mxu0 %v1396_v0 }
 0x742   :  { %1292 = vmatpush3.bf16.msra.mxu0 %v1291_v33 }
 0x743   :  { %1293 = vmatprep.subr.bf16.mxu0 %v1396_v0 }
 0x746   :  { %1295 = vmatpush3.bf16.msra.mxu0 %v1294_v37 }
 0x747   :  { %1296 = vmatprep.subr.bf16.mxu0 %v1396_v0 }
 0x74a   :  { %1298 = vmatpush3.bf16.msra.mxu0 %v1297_v40 }
 0x74b   :  { %1299 = vmatprep.subr.bf16.mxu0 %v1396_v0  ;;  %v955_v0 = vld [vmem:[%s1591_s2 + $0xc] sm:$0x7]  ;;  %s1343_s2 = scalar_lea.vmem %s935_s12, 128 }
 0x74c   :  { %v832_v57 = vrot.slane %v955_v0, %v1462_v29  ;;  %p1344_p8 = scmp.ne.s32.totalorder %s935_s12, %s1343_s2  ;;  %p1349_p10 = scmp.lt.s32.totalorder %s1343_s2, %s1343_s2 }
 0x74e   :  { %1301 = vmatpush3.bf16.msra.mxu0 %v1300_v43  ;;  %p1350_p11 = por %p1349_p10, %p1348_p9 }
 0x750   :  { %p1351_p12 = pnand %p1350_p11, %p1344_p8 }
 0x804   :  { %v788_v44 = vpop.f32.mrb[6].mxu0 }
 0x805   :  { %v792_v45 = vmul.f32 0.125, %v788_v44  ;;  %v1170_v46 = vpop.f32.mrb[7].mxu0 }
 0x807   :  { %v793_v47 = vadd.f32 1e-05, %v792_v45 }
 0x809   :  { %1315 = vrsqrt.f32 %v793_v47 }
 0x813   :  { %v1316_v48 = vpop.eup %1315 }
 0x814   :  { %v796_v49 = vrot.slane %v1316_v48, 7 }
 0x816   :  { %v798_v50 = vmul.f32 %v1534_v6, %v796_v49 }
 0x818   :  { %v802_v52 = vrot.slane %v798_v50, %v1494_v11 }
 0x81a   :  { %v803_v53 = vmul.f32 %v802_v52, %v720_v19 }
 0x81c   :  { %v808_v54 = vadd.f32 %v807_v51, %v803_v53 }
 0x81e   :  { %v809_v55 = vmax.f32 %v808_v54, 0.0 }
 0x820   :  { %1204 = vmatmul.mubr.f32.vlgmr.msra.gmra.mrb[8].mxu0 %v809_v55 }
 0x8f3   :  { %v899_v58 = vpop.f32.mrb[8].mxu0 }
 0x8f4   :  { %v900_v59 = vadd.f32 %v899_v58, %v832_v57  ;;  %v1205_v60 = vpop.f32.mrb[9].mxu0 }
 0x8f6   :  { %v906_v61 = vsel %vm905_vm2, %v900_v59, -1e+30 }
 0x8f7   :  { %907 = vmax.xlane.f32.xlu0 %v906_v61 }
 0x984   :  { %v908_v9 = vpop.xlane.xlu0 %907 }
 0x985   :  { %v909_v11 = vsub.f32 %v906_v61, %v908_v9 }
 0x987   :  { %v910_v62 = vmul.f32 1.442695, %v909_v11 }
 0x989   :  { %1317 = vpow2.f32 %v910_v62 }
 0x993   :  { %v1318_v63 = vpop.eup %1317 }
 0x994   :  { %v912_v2 = vsel %vm905_vm2, %v1318_v63, 0.0 }
 0x995   :  { %913 = vadd.xlane.f32.xlu0 %v912_v2 }
 0x996   :  { %1354 = shalt.err (!%p1351_p12)
}
 0x997   :  { %s1355_s15 = scalar_lea.hbm %s1593_s4, 128 }
 0x998   :  { %p1356_p13 = scmp.ne.s32.totalorder %s1593_s4, %s1355_s15  ;;  %p1359_p0 = scmp.lt.u32.totalorder %s1355_s15, %s1593_s4 }
 0x99a   :  { %p1361_p1 = pnand %p1359_p0, %p1356_p13 }
 0x99c   :  { %1364 = shalt.err (!%p1361_p1)
}
 0x99d   :  { %937 = dma.vmem_to_hbm [thread:$0]  %s935_s12, 128, %s1593_s4, [#allocation7]  }
 0x99e   :  { %s1401_s22 = smov [#allocation5]  }
 0x99f   :  { %s924_s23 = sshll.u32 %s1401_s22, 4  ;;  %s925_s23 = int_to_ptr.vmem [resolvable:$true] %s924_s23 }
 0x9a0   :  { %s1365_s24 = scalar_lea.vmem %s925_s23, 128  ;;  %p1370_p3 = scmp.lt.s32.totalorder %s925_s23, %s925_s23 }
 0x9a1   :  { %p1366_p2 = scmp.ne.s32.totalorder %s925_s23, %s1365_s24  ;;  %p1371_p4 = scmp.lt.s32.totalorder %s1365_s24, %s1365_s24 }
 0x9a3   :  { %p1372_p5 = por %p1371_p4, %p1370_p3 }
 0x9a5   :  { %p1373_p6 = pnand %p1372_p5, %p1366_p2 }
 0xa22   :  { %v914_v27 = vpop.xlane.xlu0 %913 }
 0xa23   :  { %1319 = vrcp.f32 %v914_v27 }
 0xa2d   :  { %v1320_v29 = vpop.eup %1319 }
 0xa2e   :  { %v916_v3 = vmul.f32 %v1320_v29, %v912_v2 }
 0xa30   :  { %917 = vst [vmem:[#allocation5] sm:$0xff] %v916_v3 }
 0xa31   :  { %1376 = shalt.err (!%p1373_p6)
}
 0xa32   :  { %s1377_s27 = scalar_lea.hbm %s1592_s3, 128 }
 0xa33   :  { %p1378_p7 = scmp.ne.s32.totalorder %s1592_s3, %s1377_s27  ;;  %p1381_p8 = scmp.lt.u32.totalorder %s1377_s27, %s1592_s3 }
 0xa35   :  { %p1383_p9 = pnand %p1381_p8, %p1378_p7 }
 0xa37   :  { %1386 = shalt.err (!%p1383_p9)
}
 0xa38   :  { %927 = dma.vmem_to_hbm [thread:$0]  %s925_s23, 128, %s1592_s3, [#allocation4]  }
 0xa39   :  { %1389 = dma.done.wait [#allocation4], 128  }
 0xa3a   :  { %1390 = vsyncadd [#allocation4], 4294967168 }
 0xa3b   :  { %1391 = dma.done.wait [#allocation7], 128  }
 0xa3c   :  { %1392 = vsyncadd [#allocation7], 4294967168 }
 0xa3d   :  { %944 = vsyncpa [#allocation3], 1 }
 0xa3e   :  { %945 = vsyncpa [#allocation4], 1 }
 0xa3f   :  { %946 = vsyncpa [#allocation7], 1 }

</bundles_post_ra>
